<compile_context>
chip_gen: v6e
topology: v6e:2x2x1
jax: 0.10.0
libtpu: 0.0.40
codegen_flags: <defaults>
</compile_context>

<pallas_src>
import jax
import jax.numpy as jnp
from jax import lax
from jax.experimental import pallas as pl
from jax.experimental.pallas import tpu as pltpu

LANE = 128


def discriminator_kernel(x_ref, w1_ref, b1_ref, w2_ref, b2_ref, w3_ref, b3_ref,
                         out_ref):
    # x tile is (tb, num_inputs) in its native layout; cast to bf16 for the MXU.
    xb = x_ref[...].astype(jnp.bfloat16)

    # fc1 + tanh:  w1 (H, In) ⋅ x (tb, In)^T  ->  (H, tb)   (batch on lanes)
    h1 = jnp.tanh(
        lax.dot_general(w1_ref[...], xb, (((1,), (1,)), ((), ())),
                        preferred_element_type=jnp.float32)
        + b1_ref[...])

    # fc2 + tanh:  w2 (H, H) ⋅ h1 (H, tb)  ->  (H, tb)
    h2 = jnp.tanh(
        jnp.dot(w2_ref[...], h1.astype(jnp.bfloat16),
                preferred_element_type=jnp.float32)
        + b2_ref[...])

    # fc3 (output width 1): VPU multiply + sublane reduce -> lane-dense (1, tb).
    out_ref[...] = (jnp.sum(h2 * w3_ref[...], axis=0, keepdims=True)
                    + b3_ref[...]).astype(out_ref.dtype)


def _pick_tile_b(B, tile_b):
    """Lane-aligned batch tile; keeps >= 2 grid steps when possible (v7x)."""
    if B < 2 * LANE:
        return B                                   # single full-extent block
    tb = min(tile_b, (B // 2 // LANE) * LANE)      # >= 2 steps, lane-aligned
    return max(tb, LANE)


def _nbytes(a):
    return a.size * a.dtype.itemsize


def discriminator_forward(x, params, *, tile_b=2048):
    """x: [B, num_inputs] float32 -> [B, 1] float32."""
    w1, b1, w2, b2, w3, b3 = params  # w1:(H,In) bf16, b1:(H,1), w2:(H,H) bf16, b2:(H,1), w3:(H,1), b3:(1,1)
    B, num_inputs = x.shape
    H = w1.shape[0]

    tb = _pick_tile_b(B, tile_b)
    grid = (pl.cdiv(B, tb),)   # ragged trailing block handled by Pallas (no pad copy)

    weight_spec = lambda shape: pl.BlockSpec(shape, lambda i: (0, 0))
    # NOTE: resident weights could be single-buffered via pipeline_mode=pl.Buffered(1)
    # to halve their VMEM footprint at large H (v7x 64 MiB budget); at H this small
    # it is negligible, so we keep the default for robustness.

    cost = pl.CostEstimate(
        flops=2 * B * (num_inputs * H + H * H + H),
        transcendentals=2 * B * H,
        bytes_accessed=_nbytes(x) + 4 * B + sum(_nbytes(p) for p in params),
    )

    # VMEM budget: double-buffered x/out tiles + resident params + f32 intermediates.
    vmem_est = (2 * (tb * num_inputs * 4 + tb * 4)
                + 2 * sum(_nbytes(p) for p in params)
                + 6 * H * tb * 4)
    vmem_limit = int(min(64 << 20, max(16 << 20, 2 * vmem_est)))

    out_row = pl.pallas_call(
        discriminator_kernel,
        out_shape=jax.ShapeDtypeStruct((1, B), jnp.float32),
        grid=grid,
        in_specs=[
            pl.BlockSpec((tb, num_inputs), lambda i: (i, 0)),  # x tile (pipelined)
            weight_spec((H, num_inputs)),                      # w1 (bf16, resident)
            weight_spec((H, 1)),                               # b1 (f32)
            weight_spec((H, H)),                               # w2 (bf16)
            weight_spec((H, 1)),                               # b2 (f32)
            weight_spec((H, 1)),                               # w3 (f32, column vector)
            weight_spec((1, 1)),                               # b3 (f32)
        ],
        out_specs=pl.BlockSpec((1, tb), lambda i: (0, i)),     # lane-dense output row
        compiler_params=pltpu.CompilerParams(
            dimension_semantics=("parallel",),
            vmem_limit_bytes=vmem_limit),
        cost_estimate=cost,
    )(x, w1, b1, w2, b2, w3, b3)

    # Back to the PyTorch output layout [B, 1] (tiny transpose).
    return out_row.T


def init_params(key, num_inputs, hidden_size):
    """Deterministic synthetic parameters (xavier-ish normals, zero biases).
    Matmul weights stored in bf16 (MXU-native); biases / fc3 path in f32."""
    k1, k2, k3 = jax.random.split(key, 3)
    w1 = (jax.random.normal(k1, (hidden_size, num_inputs), jnp.float32)
          * (1.0 / jnp.sqrt(num_inputs))).astype(jnp.bfloat16)
    b1 = jnp.zeros((hidden_size, 1), jnp.float32)
    w2 = (jax.random.normal(k2, (hidden_size, hidden_size), jnp.float32)
          * (1.0 / jnp.sqrt(hidden_size))).astype(jnp.bfloat16)
    b2 = jnp.zeros((hidden_size, 1), jnp.float32)
    # fc3 initialized separately in the torch module (scale=1.0)
    w3 = jax.random.normal(k3, (hidden_size, 1), jnp.float32) * (
        1.0 / jnp.sqrt(hidden_size))
    b3 = jnp.zeros((1, 1), jnp.float32)
    return (w1, b1, w2, b2, w3, b3)


def reference_forward(x, params):
    """Pure-JAX reference using the same bf16 MXU operands as the kernel."""
    w1, b1, w2, b2, w3, b3 = params
    h1 = jnp.tanh(jnp.dot(x.astype(jnp.bfloat16), w1.T,
                          preferred_element_type=jnp.float32) + b1[:, 0])
    h2 = jnp.tanh(jnp.dot(h1.astype(jnp.bfloat16), w2.T,
                          preferred_element_type=jnp.float32) + b2[:, 0])
    return jnp.dot(h2, w3, preferred_element_type=jnp.float32) + b3[:, 0]


if __name__ == "__main__":
    key = jax.random.PRNGKey(0)
    kx, kp, kx2 = jax.random.split(key, 3)

    num_inputs = 16
    hidden_size = 32
    params = init_params(kp, num_inputs, hidden_size)

    # Small case (single full-extent block), matching the module's tiny shapes.
    x_small = jax.random.normal(kx, (8, num_inputs), jnp.float32)
    out_small = jax.block_until_ready(discriminator_forward(x_small, params))
    ref_small = reference_forward(x_small, params)
    assert out_small.shape == (8, 1)
    assert jnp.allclose(out_small, ref_small, atol=1e-2, rtol=1e-2)

    # Larger, non-multiple batch: multi-step grid + ragged trailing block.
    x_big = jax.random.normal(kx2, (300, num_inputs), jnp.float32)
    out_big = jax.block_until_ready(discriminator_forward(x_big, params))
    ref_big = reference_forward(x_big, params)
    assert out_big.shape == (300, 1)
    assert jnp.allclose(out_big, ref_big, atol=1e-2, rtol=1e-2)

    print("KERNEL_OK")
</pallas_src>

<mosaic_0001>
module attributes {stable_mosaic.version = 11 : i64} {
  func.func @discriminator_kernel(%arg0: i32, %arg1: memref<8x16xf32, #tpu.memory_space<vmem>>, %arg2: memref<32x16xbf16, #tpu.memory_space<vmem>>, %arg3: memref<32x1xf32, #tpu.memory_space<vmem>>, %arg4: memref<32x32xbf16, #tpu.memory_space<vmem>>, %arg5: memref<32x1xf32, #tpu.memory_space<vmem>>, %arg6: memref<32x1xf32, #tpu.memory_space<vmem>>, %arg7: memref<1x1xf32, #tpu.memory_space<vmem>>, %arg8: memref<1x8xf32, #tpu.memory_space<vmem>>) attributes {dimension_semantics = [#tpu.dimension_semantics<parallel>], iteration_bounds = array<i64: 1>, scalar_prefetch = 0 : i64, scratch_operands = 0 : i64, tpu.core_type = #tpu.core_type<tc>, window_params = [{transform_indices = @transform_0, window_bounds = array<i64: 8, 16>}, {pipeline_mode = #tpu.pipeline_mode<synchronous>, transform_indices = @transform_1, window_bounds = array<i64: 32, 16>}, {pipeline_mode = #tpu.pipeline_mode<synchronous>, transform_indices = @transform_2, window_bounds = array<i64: 32, 1>}, {pipeline_mode = #tpu.pipeline_mode<synchronous>, transform_indices = @transform_3, window_bounds = array<i64: 32, 32>}, {pipeline_mode = #tpu.pipeline_mode<synchronous>, transform_indices = @transform_4, window_bounds = array<i64: 32, 1>}, {pipeline_mode = #tpu.pipeline_mode<synchronous>, transform_indices = @transform_5, window_bounds = array<i64: 32, 1>}, {pipeline_mode = #tpu.pipeline_mode<synchronous>, transform_indices = @transform_6, window_bounds = array<i64: 1, 1>}, {transform_indices = @transform_7, window_bounds = array<i64: 1, 8>}]} {
    %c0 = arith.constant 0 : index
    %c0_0 = arith.constant 0 : index
    %0 = vector.load %arg1[%c0, %c0_0] : memref<8x16xf32, #tpu.memory_space<vmem>>, vector<8x16xf32>
    %1 = arith.truncf %0 : vector<8x16xf32> to vector<8x16xbf16>
    %c0_1 = arith.constant 0 : index
    %c0_2 = arith.constant 0 : index
    %2 = vector.load %arg2[%c0_1, %c0_2] : memref<32x16xbf16, #tpu.memory_space<vmem>>, vector<32x16xbf16>
    %cst = arith.constant dense<0.000000e+00> : vector<32x8xf32>
    %3 = tpu.matmul %2, %1, %cst {dimension_numbers = #tpu.dot_dimension_numbers<[1], [1], [0], [0], [0, 0, 1, 0], [], []>} : vector<32x16xbf16>, vector<8x16xbf16>, vector<32x8xf32> -> vector<32x8xf32>
    %c0_3 = arith.constant 0 : index
    %c0_4 = arith.constant 0 : index
    %4 = vector.load %arg3[%c0_3, %c0_4] : memref<32x1xf32, #tpu.memory_space<vmem>>, vector<32x1xf32>
    %5 = vector.broadcast %4 : vector<32x1xf32> to vector<32x8xf32>
    %6 = arith.addf %3, %5 : vector<32x8xf32>
    %7 = math.tanh %6 : vector<32x8xf32>
    %c0_5 = arith.constant 0 : index
    %c0_6 = arith.constant 0 : index
    %8 = vector.load %arg4[%c0_5, %c0_6] : memref<32x32xbf16, #tpu.memory_space<vmem>>, vector<32x32xbf16>
    %9 = arith.truncf %7 : vector<32x8xf32> to vector<32x8xbf16>
    %cst_7 = arith.constant dense<0.000000e+00> : vector<32x8xf32>
    %10 = tpu.matmul %8, %9, %cst_7 {dimension_numbers = #tpu.dot_dimension_numbers<[1], [0], [0], [1], [0, 0, 1, 1], [], []>} : vector<32x32xbf16>, vector<32x8xbf16>, vector<32x8xf32> -> vector<32x8xf32>
    %c0_8 = arith.constant 0 : index
    %c0_9 = arith.constant 0 : index
    %11 = vector.load %arg5[%c0_8, %c0_9] : memref<32x1xf32, #tpu.memory_space<vmem>>, vector<32x1xf32>
    %12 = vector.broadcast %11 : vector<32x1xf32> to vector<32x8xf32>
    %13 = arith.addf %10, %12 : vector<32x8xf32>
    %14 = math.tanh %13 : vector<32x8xf32>
    %c0_10 = arith.constant 0 : index
    %c0_11 = arith.constant 0 : index
    %15 = vector.load %arg6[%c0_10, %c0_11] : memref<32x1xf32, #tpu.memory_space<vmem>>, vector<32x1xf32>
    %16 = vector.broadcast %15 : vector<32x1xf32> to vector<32x8xf32>
    %17 = arith.mulf %14, %16 : vector<32x8xf32>
    %cst_12 = arith.constant dense<0.000000e+00> : vector<8xf32>
    %18 = vector.multi_reduction <add>, %17, %cst_12 [0] : vector<32x8xf32> to vector<8xf32>
    %19 = vector.shape_cast %18 : vector<8xf32> to vector<1x8xf32>
    %c0_13 = arith.constant 0 : index
    %c0_14 = arith.constant 0 : index
    %20 = vector.load %arg7[%c0_13, %c0_14] : memref<1x1xf32, #tpu.memory_space<vmem>>, vector<1x1xf32>
    %21 = vector.broadcast %20 : vector<1x1xf32> to vector<1x8xf32>
    %22 = arith.addf %19, %21 : vector<1x8xf32>
    %c0_15 = arith.constant 0 : index
    %c0_16 = arith.constant 0 : index
    %23 = vector.load %arg8[%c0_15, %c0_16] : memref<1x8xf32, #tpu.memory_space<vmem>>, vector<1x8xf32>
    tpu.vector_store %arg8[%c0_15, %c0_16], %22 {strides = array<i32>} : memref<1x8xf32, #tpu.memory_space<vmem>>, vector<1x8xf32>,
    return
  }
  func.func @transform_0(%arg0: i32) -> (i32, i32) {
    %c0_i32 = arith.constant 0 : i32
    %c0_i32_0 = arith.constant 0 : i32
    return %arg0, %c0_i32 : i32, i32
  }
  func.func @transform_1(%arg0: i32) -> (i32, i32) {
    %c0_i32 = arith.constant 0 : i32
    %c0_i32_0 = arith.constant 0 : i32
    %c0_i32_1 = arith.constant 0 : i32
    return %c0_i32, %c0_i32_0 : i32, i32
  }
  func.func @transform_2(%arg0: i32) -> (i32, i32) {
    %c0_i32 = arith.constant 0 : i32
    %c0_i32_0 = arith.constant 0 : i32
    %c0_i32_1 = arith.constant 0 : i32
    return %c0_i32, %c0_i32_0 : i32, i32
  }
  func.func @transform_3(%arg0: i32) -> (i32, i32) {
    %c0_i32 = arith.constant 0 : i32
    %c0_i32_0 = arith.constant 0 : i32
    %c0_i32_1 = arith.constant 0 : i32
    return %c0_i32, %c0_i32_0 : i32, i32
  }
  func.func @transform_4(%arg0: i32) -> (i32, i32) {
    %c0_i32 = arith.constant 0 : i32
    %c0_i32_0 = arith.constant 0 : i32
    %c0_i32_1 = arith.constant 0 : i32
    return %c0_i32, %c0_i32_0 : i32, i32
  }
  func.func @transform_5(%arg0: i32) -> (i32, i32) {
    %c0_i32 = arith.constant 0 : i32
    %c0_i32_0 = arith.constant 0 : i32
    %c0_i32_1 = arith.constant 0 : i32
    return %c0_i32, %c0_i32_0 : i32, i32
  }
  func.func @transform_6(%arg0: i32) -> (i32, i32) {
    %c0_i32 = arith.constant 0 : i32
    %c0_i32_0 = arith.constant 0 : i32
    %c0_i32_1 = arith.constant 0 : i32
    return %c0_i32, %c0_i32_0 : i32, i32
  }
  func.func @transform_7(%arg0: i32) -> (i32, i32) {
    %c0_i32 = arith.constant 0 : i32
    %c0_i32_0 = arith.constant 0 : i32
    return %c0_i32, %arg0 : i32, i32
  }
}

</mosaic_0001>

<bundles_post_ra>
// kernel: tpu_custom_call.1
= control target key start
LH: loop header
LB: loop body
LE: loop exit
PB: predicated region body
PF: predicated region fallthrough
CT: control target
= control target key end

     0   :  { %s483_s0 = inlined_call_operand.vmem [shape: f32[8,16], index: 0, kind: input, shape index: {}]   ;;  %s484_s1 = inlined_call_operand.vmem [shape: bf16[32,16], index: 1, kind: input, shape index: {}]   ;;  %s485_s2 = inlined_call_operand.vmem [shape: f32[32,1], index: 2, kind: input, shape index: {}]   ;;  %s486_s3 = inlined_call_operand.vmem [shape: bf16[32,32], index: 3, kind: input, shape index: {}]   ;;  %s487_s4 = inlined_call_operand.vmem [shape: f32[32,1], index: 4, kind: input, shape index: {}]   ;;  %s488_s5 = inlined_call_operand.vmem [shape: f32[32,1], index: 5, kind: input, shape index: {}]   ;;  %s489_s6 = inlined_call_operand.<no memory space> [shape: f32[1,1], index: 6, kind: input, shape index: {}]   ;;  %s490_s7 = inlined_call_operand.hbm [shape: f32[1,8], index: 7, kind: output, shape index: {}]  }
   0x1   :  { %v12_v0 = vstv %s489_s6 }
   0x2   :  { %13 = vst [vmem:[#allocation2] sm:$0x1] %v12_v0 }
   0x3   :  { %v30_v1 = vld [vmem:[%s483_s0] sm:$0xff]  ;;  %vm70_vm0 = vcmask 130048   ;;  %v378_v4 = vmov 0   ;;  %v38_v5 = vld [vmem:[%s485_s2 + $0x10] sm:$0xff]  ;;  %v39_v8 = vld [vmem:[%s485_s2 + $0x18] sm:$0xff] }
   0x4   :  { %v31_v2 = vpack.c.bf16 %v30_v1, %v30_v1  ;;  %v336_v3 = vld [vmem:[%s484_s1] sm:$0xff]   ;;  %334 = vset.pattern.permute.xlu0 %v378_v4  ;;  %335 = vset.pattern.permute.xlu1 %v378_v4  ;;  %v337_v9 = vld [vmem:[%s484_s1 + $0x8] sm:$0xff]  }
   0x5   :  { %319 = vmatprep.mubr.msk.bf16.mxu0 %vm70_vm0, %v336_v3  ;;  %v36_v7 = vld [vmem:[%s485_s2] sm:$0xff]  ;;  %52 = vperm.xlu0 %334, %v38_v5   ;;  %v37_v10 = vld [vmem:[%s485_s2 + $0x8] sm:$0xff] }
   0x6   :  { %331 = vmatprep.subr.msk.bf16.mxu0 %vm70_vm0, %v31_v2  ;;  %v78_v6 = vsel %vm70_vm0, %v31_v2, 0  ;;  %42 = vperm.xlu1 %335, %v36_v7  }
   0x7   :  { %318 = vmatpush3.bf16.xpose.msra.mxu0 %v78_v6 }
   0x9   :  { %57 = vperm.xlu0 %334, %v39_v8  }
   0xa   :  { %14 = vsyncpa [#allocation4], 0  ;;  %v139_v11 = vld [vmem:[%s487_s4] sm:$0xff]  ;;  %47 = vperm.xlu1 %335, %v37_v10   ;;  %v140_v12 = vld [vmem:[%s487_s4 + $0x8] sm:$0xff]  ;;  %vm173_vm1 = vcmask 261120   ;;  %vm261_vm2 = vcmask 64512   ;;  %v281_v6 = vlaneseq }
   0xb   :  { %v141_v13 = vld [vmem:[%s487_s4 + $0x10] sm:$0xff]  ;;  %v142_v14 = vld [vmem:[%s487_s4 + $0x18] sm:$0xff]  ;;  %v233_v15 = vld [vmem:[%s488_s5] sm:$0xff]  ;;  %vm286_vm3 = vcmask 57344  }
   0xc   :  { %v234_v16 = vld [vmem:[%s488_s5 + $0x8] sm:$0xff]  ;;  %v235_v17 = vld [vmem:[%s488_s5 + $0x10] sm:$0xff]  ;;  %v236_v18 = vld [vmem:[%s488_s5 + $0x18] sm:$0xff] }
   0xd   :  { %145 = vperm.xlu0 %334, %v139_v11   ;;  %v275_v19 = vld [vmem:[#allocation2] sm:$0x1]  ;;  %v339_v39 = vld [vmem:[%s486_s3 + $0x8] sm:$0xff]  }
   0xe   :  { %320 = vmatmul.mubr.msk.bf16.vlgmr.msra.gmra.mxu0 %vm70_vm0, %v337_v9  ;;  %150 = vperm.xlu1 %335, %v140_v12   ;;  %v338_v20 = vld [vmem:[%s486_s3] sm:$0xff]   ;;  %v282_v9 = vshrl.u32 %v281_v6, 7  ;;  %s379_s3 = smov [#allocation3]  }
   0xf   :  { %327 = vmatprep.mubr.msk.bf16.mxu1 %vm173_vm1, %v338_v20  ;;  %s294_s8 = sshll.u32 %s379_s3, 4  ;;  %s295_s8 = int_to_ptr.vmem [resolvable:$true] %s294_s8 }
  0x10   :  { %v283_v12 = vsub.s32 0, %v282_v9  ;;  %s356_s0 = scalar_lea.vmem %s295_s8, 16  ;;  %s360_s6 = scalar_lea.vmem %s295_s8, 32 }
  0x11   :  { %155 = vperm.xlu0 %334, %v141_v13   ;;  %p357_p0 = scmp.ne.s32.totalorder %s295_s8, %s356_s0  ;;  %p361_p1 = scmp.lt.s32.totalorder %s295_s8, %s295_s8 }
  0x12   :  { %160 = vperm.xlu1 %335, %v142_v14   ;;  %p362_p2 = scmp.lt.s32.totalorder %s360_s6, %s356_s0 }
  0x14   :  { %p363_p3 = por %p362_p2, %p361_p1 }
  0x15   :  { %239 = vperm.xlu0 %334, %v233_v15  }
  0x16   :  { %244 = vperm.xlu1 %335, %v234_v16   ;;  %p364_p4 = pnand %p363_p3, %p357_p0 }
  0x19   :  { %249 = vperm.xlu0 %334, %v235_v17  }
  0x1a   :  { %254 = vperm.xlu1 %335, %v236_v18  }
  0x1d   :  { %278 = vperm.xlu0 %334, %v275_v19  }
  0x80   :  { %v53_v21 = vpop.permute.xlu0 %52 }
  0x81   :  { %v43_v22 = vpop.permute.xlu1 %42 }
  0x84   :  { %v58_v26 = vpop.permute.xlu0 %57 }
  0x85   :  { %v48_v30 = vpop.permute.xlu1 %47 }
  0x88   :  { %v146_v40 = vpop.permute.xlu0 %145 }
  0x89   :  { %v151_v41 = vpop.permute.xlu1 %150 }
  0x8c   :  { %v156_v43 = vpop.permute.xlu0 %155 }
  0x8d   :  { %v161_v47 = vpop.permute.xlu1 %160 }
  0x90   :  { %v240_v52 = vpop.permute.xlu0 %239 }
  0x91   :  { %v245_v54 = vpop.permute.xlu1 %244 }
  0x94   :  { %v250_v59 = vpop.permute.xlu0 %249 }
  0x95   :  { %v255_v62 = vpop.permute.xlu1 %254 }
  0x98   :  { %v279_v14 = vpop.permute.xlu0 %278 }
  0x99   :  { %v284_v16 = vrot.slane %v279_v14, %v283_v12 }
  0xce   :  { %v321_v23 = vpop.f32.mrf.mxu0 }
  0xcf   :  { %v123_v24 = vadd.f32 %v321_v23, %v53_v21 }
  0xd0   :  { %v114_v25 = vpop.f32.mrf.mxu0 }
  0xd1   :  { %v115_v27 = vadd.f32 %v114_v25, %v43_v22  ;;  %340 = vtanh.f32 %v123_v24 }
  0xd2   :  { %v322_v28 = vpop.f32.mrf.mxu0 }
  0xd3   :  { %v126_v29 = vadd.f32 %v322_v28, %v58_v26 }
  0xd4   :  { %v117_v31 = vpop.f32.mrf.mxu0 }
  0xd5   :  { %342 = vtanh.f32 %v126_v29  ;;  %v118_v32 = vadd.f32 %v117_v31, %v48_v30 }
  0xd6   :  { %344 = vtanh.f32 %v115_v27 }
  0xd7   :  { %346 = vtanh.f32 %v118_v32 }
  0xde   :  { %v341_v33 = vpop.eup %340 }
  0xe2   :  { %v343_v34 = vpop.eup %342 }
  0xe3   :  { %v345_v35 = vpop.eup %344  ;;  %v138_v36 = vpack.c.bf16 %v343_v34, %v341_v33 }
  0xe4   :  { %v347_v37 = vpop.eup %346 }
  0xe5   :  { %323 = vmatprep.subr.bf16.mxu1 %v138_v36  ;;  %v137_v38 = vpack.c.bf16 %v347_v37, %v345_v35 }
  0xe6   :  { %324 = vmatpush3.bf16.msra.mxu1 %v138_v36 }
  0xe7   :  { %325 = vmatprep.subr.bf16.mxu1 %v137_v38 }
  0xea   :  { %326 = vmatpush3.bf16.msra.mxu1 %v137_v38 }
  0xed   :  { %328 = vmatmul.mubr.msk.bf16.vlgmr.msra.gmra.mxu1 %vm173_vm1, %v339_v39 }
 0x1ad   :  { %v329_v42 = vpop.f32.mrf.mxu1 }
 0x1ae   :  { %v223_v45 = vadd.f32 %v329_v42, %v156_v43 }
 0x1af   :  { %v214_v44 = vpop.f32.mrf.mxu1 }
 0x1b0   :  { %v215_v46 = vadd.f32 %v214_v44, %v146_v40 }
 0x1b1   :  { %v330_v48 = vpop.f32.mrf.mxu1 }
 0x1b2   :  { %348 = vtanh.f32 %v215_v46  ;;  %v226_v49 = vadd.f32 %v330_v48, %v161_v47 }
 0x1b3   :  { %v217_v50 = vpop.f32.mrf.mxu1  ;;  %350 = vtanh.f32 %v223_v45 }
 0x1b4   :  { %v218_v51 = vadd.f32 %v217_v50, %v151_v41  ;;  %352 = vtanh.f32 %v226_v49 }
 0x1b6   :  { %354 = vtanh.f32 %v218_v51 }
 0x1bf   :  { %v349_v53 = vpop.eup %348 }
 0x1c0   :  { %v351_v55 = vpop.eup %350  ;;  %v257_v57 = vmul.f32 %v349_v53, %v240_v52 }
 0x1c1   :  { %v353_v56 = vpop.eup %352  ;;  %v259_v60 = vmul.f32 %v351_v55, %v250_v59 }
 0x1c2   :  { %v260_v63 = vmul.f32 %v353_v56, %v255_v62  ;;  %v262_v0 = vsel %vm261_vm2, %v257_v57, 0.0 }
 0x1c3   :  { %v355_v58 = vpop.eup %354  ;;  %v265_v3 = vsel %vm261_vm2, %v259_v60, 0.0 }
 0x1c4   :  { %v258_v61 = vmul.f32 %v355_v58, %v245_v54  ;;  %v267_v5 = vsel %vm261_vm2, %v260_v63, 0.0 }
 0x1c6   :  { %v263_v1 = vsel %vm261_vm2, %v258_v61, 0.0 }
 0x1c7   :  { %v264_v2 = vadd.f32 %v263_v1, %v262_v0 }
 0x1c9   :  { %v266_v4 = vadd.f32 %v265_v3, %v264_v2 }
 0x1cb   :  { %v268_v7 = vadd.f32 %v267_v5, %v266_v4 }
 0x1cd   :  { %v269_v8 = vrot.slane %v268_v7, 4 }
 0x1cf   :  { %v270_v10 = vadd.f32 %v269_v8, %v268_v7 }
 0x1d1   :  { %v271_v11 = vrot.slane %v270_v10, 2 }
 0x1d3   :  { %v272_v13 = vadd.f32 %v271_v11, %v270_v10 }
 0x1d5   :  { %v273_v15 = vrot.slane %v272_v13, 1 }
 0x1d7   :  { %v274_v17 = vadd.f32 %v273_v15, %v272_v13 }
 0x1d9   :  { %v285_v18 = vadd.f32 %v284_v16, %v274_v17 }
 0x1db   :  { %287 = vst.msk [vmem:[#allocation3] sm:$0x1] %vm286_vm3, %v285_v18 }
 0x1dc   :  { %367 = shalt.err (!%p364_p4)
}
 0x1dd   :  { %297 = dma.vmem_to_hbm [thread:$0]  %s295_s8, 16, %s490_s7, [#allocation4]  }
 0x1de   :  { %376 = dma.done.wait [#allocation4], 16  }
 0x1df   :  { %377 = vsyncadd [#allocation4], 4294967280 }
 0x1e0   :  { %301 = vsyncpa [#allocation4], 1 }

</bundles_post_ra>
